<compile_context>
chip_gen: v7x
topology: tpu7x:2x2x1
jax: 0.10.0
libtpu: 0.0.40
codegen_flags: <defaults>
</compile_context>

<pallas_src>
import functools

import jax
import jax.numpy as jnp
from jax.experimental import pallas as pl
from jax.experimental.pallas import tpu as pltpu


_INV_SQRT2 = 0.7071067811865476


def _erf_approx(x):
    """Abramowitz & Stegun 7.1.26 erf approximation, max abs error ~1.5e-7."""
    p = 0.3275911
    a1, a2, a3, a4, a5 = (0.254829592, -0.284496736, 1.421413741,
                          -1.453152027, 1.061405429)
    sign = jnp.where(x < 0.0, -1.0, 1.0)
    ax = jnp.abs(x)
    t = 1.0 / (1.0 + p * ax)
    poly = ((((a5 * t + a4) * t + a3) * t + a2) * t + a1) * t
    return sign * (1.0 - poly * jnp.exp(-ax * ax))


def _make_transform_kernel(eps):
    def kernel(x_ref, wt_ref, b_ref, g_ref, beta_ref, o_ref):
        # x_ref: (TB, H), wt_ref: (H, H), b/g/beta: (1, H), o_ref: (TB, H)
        h = jnp.dot(x_ref[...], wt_ref[...], preferred_element_type=jnp.float32)
        h = h + b_ref[...].astype(jnp.float32)

        # Exact (erf-based) GELU, matching ACT2FN["gelu"].
        h = 0.5 * h * (1.0 + _erf_approx(h * _INV_SQRT2))

        # LayerNorm over the hidden (lane) axis.
        mean = jnp.mean(h, axis=-1, keepdims=True)
        centered = h - mean
        var = jnp.mean(centered * centered, axis=-1, keepdims=True)
        inv = jax.lax.rsqrt(var + eps)
        y = centered * inv * g_ref[...].astype(jnp.float32) \
            + beta_ref[...].astype(jnp.float32)

        o_ref[...] = y.astype(o_ref.dtype)

    return kernel


def _round_up(x, m):
    return ((x + m - 1) // m) * m


@functools.partial(jax.jit, static_argnames=("eps", "block_rows"))
def bert2d_prediction_head_transform(hidden_states, dense_weight, dense_bias,
                                     ln_gamma, ln_beta, *, eps=1e-12,
                                     block_rows=None):
    """hidden_states: [..., H]; dense_weight: [H, H] (PyTorch layout, out x in);
    dense_bias / ln_gamma / ln_beta: [H]. Returns same shape as hidden_states."""
    orig_shape = hidden_states.shape
    H = orig_shape[-1]
    x2d = hidden_states.reshape(-1, H)
    R = x2d.shape[0]
    itemsize = jnp.dtype(x2d.dtype).itemsize

    # Row tile: multiple of 8 sublanes, ~2 MiB of input per tile so the
    # double-buffered stream + resident weight fit comfortably in VMEM on v7x.
    if block_rows is None:
        block_rows = max(8, min(1024, (2 * 1024 * 1024) // max(1, H * itemsize)))
    block_rows = max(8, (min(block_rows, _round_up(R, 8)) // 8) * 8)

    R_pad = _round_up(R, block_rows)
    if R_pad != R:
        x2d = jnp.pad(x2d, ((0, R_pad - R), (0, 0)))

    weight_t = dense_weight.T                     # [H, H]: kernel does x @ W.T
    bias2d = dense_bias.reshape(1, H)
    gamma2d = ln_gamma.reshape(1, H)
    beta2d = ln_beta.reshape(1, H)

    grid = (R_pad // block_rows,)

    cost = pl.CostEstimate(
        flops=2 * R_pad * H * H + 20 * R_pad * H,
        transcendentals=R_pad * H + R_pad,
        bytes_accessed=itemsize * (2 * R_pad * H + H * H + 3 * H),
    )

    out2d = pl.pallas_call(
        _make_transform_kernel(eps),
        out_shape=jax.ShapeDtypeStruct((R_pad, H), hidden_states.dtype),
        grid_spec=pltpu.PrefetchScalarGridSpec(
            num_scalar_prefetch=0,
            grid=grid,
            in_specs=[
                pl.BlockSpec((block_rows, H), lambda i: (i, 0)),  # streamed rows
                pl.BlockSpec((H, H), lambda i: (0, 0)),           # resident W^T
                pl.BlockSpec((1, H), lambda i: (0, 0)),           # resident bias
                pl.BlockSpec((1, H), lambda i: (0, 0)),           # resident gamma
                pl.BlockSpec((1, H), lambda i: (0, 0)),           # resident beta
            ],
            out_specs=pl.BlockSpec((block_rows, H), lambda i: (i, 0)),
        ),
        compiler_params=pltpu.CompilerParams(
            dimension_semantics=("parallel",),     # megacore-shardable on v7x
        ),
        cost_estimate=cost,
    )(x2d, weight_t, bias2d, gamma2d, beta2d)

    return out2d[:R].reshape(orig_shape)


if __name__ == "__main__":
    key = jax.random.PRNGKey(0)
    k_x, k_w, k_b, k_g, k_be = jax.random.split(key, 5)

    batch, seq, hidden = 2, 8, 32
    eps = 1e-12

    x = jax.random.normal(k_x, (batch, seq, hidden), dtype=jnp.float32)
    # nn.Linear(H, H): weight [out, in] = [H, H], bias [H].
    weight = jax.random.normal(k_w, (hidden, hidden), dtype=jnp.float32) * 0.02
    bias = jax.random.normal(k_b, (hidden,), dtype=jnp.float32) * 0.02
    gamma = 1.0 + 0.1 * jax.random.normal(k_g, (hidden,), dtype=jnp.float32)
    beta = 0.1 * jax.random.normal(k_be, (hidden,), dtype=jnp.float32)

    out = bert2d_prediction_head_transform(x, weight, bias, gamma, beta, eps=eps)
    out = jax.block_until_ready(out)

    # Pure-JAX reference: dense -> exact GELU -> LayerNorm (same as the PyTorch module).
    h = x @ weight.T + bias
    h = jax.nn.gelu(h, approximate=False)
    mean = h.mean(axis=-1, keepdims=True)
    var = ((h - mean) ** 2).mean(axis=-1, keepdims=True)
    ref = (h - mean) / jnp.sqrt(var + eps) * gamma + beta

    assert out.shape == x.shape
    assert jnp.allclose(out, ref, atol=1e-4, rtol=1e-4), \
        float(jnp.max(jnp.abs(out - ref)))

    print("KERNEL_OK")
</pallas_src>

<mosaic_0001>
module attributes {stable_mosaic.version = 11 : i64} {
  func.func @kernel(%arg0: i32, %arg1: memref<16x32xf32, #tpu.memory_space<vmem>>, %arg2: memref<32x32xf32, #tpu.memory_space<vmem>>, %arg3: memref<1x32xf32, #tpu.memory_space<vmem>>, %arg4: memref<1x32xf32, #tpu.memory_space<vmem>>, %arg5: memref<1x32xf32, #tpu.memory_space<vmem>>, %arg6: memref<16x32xf32, #tpu.memory_space<vmem>>) attributes {dimension_semantics = [#tpu.dimension_semantics<parallel>], iteration_bounds = array<i64: 1>, scalar_prefetch = 0 : i64, scratch_operands = 0 : i64, tpu.core_type = #tpu.core_type<tc>, window_params = [{transform_indices = @transform_0, window_bounds = array<i64: 16, 32>}, {pipeline_mode = #tpu.pipeline_mode<synchronous>, transform_indices = @transform_1, window_bounds = array<i64: 32, 32>}, {pipeline_mode = #tpu.pipeline_mode<synchronous>, transform_indices = @transform_2, window_bounds = array<i64: 1, 32>}, {pipeline_mode = #tpu.pipeline_mode<synchronous>, transform_indices = @transform_3, window_bounds = array<i64: 1, 32>}, {pipeline_mode = #tpu.pipeline_mode<synchronous>, transform_indices = @transform_4, window_bounds = array<i64: 1, 32>}, {transform_indices = @transform_5, window_bounds = array<i64: 16, 32>}]} {
    %c0 = arith.constant 0 : index
    %c0_0 = arith.constant 0 : index
    %0 = vector.load %arg1[%c0, %c0_0] : memref<16x32xf32, #tpu.memory_space<vmem>>, vector<16x32xf32>
    %c0_1 = arith.constant 0 : index
    %c0_2 = arith.constant 0 : index
    %1 = vector.load %arg2[%c0_1, %c0_2] : memref<32x32xf32, #tpu.memory_space<vmem>>, vector<32x32xf32>
    %cst = arith.constant dense<0.000000e+00> : vector<16x32xf32>
    %2 = tpu.matmul %0, %1, %cst {dimension_numbers = #tpu.dot_dimension_numbers<[1], [0], [0], [1], [0, 0, 1, 1], [], []>} : vector<16x32xf32>, vector<32x32xf32>, vector<16x32xf32> -> vector<16x32xf32>
    %c0_3 = arith.constant 0 : index
    %c0_4 = arith.constant 0 : index
    %3 = vector.load %arg3[%c0_3, %c0_4] : memref<1x32xf32, #tpu.memory_space<vmem>>, vector<1x32xf32>
    %4 = vector.broadcast %3 : vector<1x32xf32> to vector<16x32xf32>
    %5 = arith.addf %2, %4 : vector<16x32xf32>
    %cst_5 = arith.constant 5.000000e-01 : f32
    %6 = vector.broadcast %cst_5 : f32 to vector<16x32xf32>
    %7 = arith.mulf %6, %5 : vector<16x32xf32>
    %cst_6 = arith.constant 0.707106769 : f32
    %8 = vector.broadcast %cst_6 : f32 to vector<16x32xf32>
    %9 = arith.mulf %5, %8 : vector<16x32xf32>
    %cst_7 = arith.constant 0.000000e+00 : f32
    %10 = vector.broadcast %cst_7 : f32 to vector<16x32xf32>
    %11 = arith.cmpf olt, %9, %10 : vector<16x32xf32>
    %cst_8 = arith.constant -1.000000e+00 : f32
    %cst_9 = arith.constant 1.000000e+00 : f32
    %12 = vector.broadcast %cst_8 : f32 to vector<16x32xf32>
    %13 = vector.broadcast %cst_9 : f32 to vector<16x32xf32>
    %14 = arith.select %11, %12, %13 : vector<16x32xi1>, vector<16x32xf32>
    %15 = math.absf %9 : vector<16x32xf32>
    %cst_10 = arith.constant 0.327591091 : f32
    %16 = vector.broadcast %cst_10 : f32 to vector<16x32xf32>
    %17 = arith.mulf %16, %15 : vector<16x32xf32>
    %cst_11 = arith.constant 1.000000e+00 : f32
    %18 = vector.broadcast %cst_11 : f32 to vector<16x32xf32>
    %19 = arith.addf %18, %17 : vector<16x32xf32>
    %cst_12 = arith.constant 1.000000e+00 : f32
    %20 = vector.broadcast %cst_12 : f32 to vector<16x32xf32>
    %21 = arith.divf %20, %19 : vector<16x32xf32>
    %cst_13 = arith.constant 1.06140542 : f32
    %22 = vector.broadcast %cst_13 : f32 to vector<16x32xf32>
    %23 = arith.mulf %22, %21 : vector<16x32xf32>
    %cst_14 = arith.constant -1.45315206 : f32
    %24 = vector.broadcast %cst_14 : f32 to vector<16x32xf32>
    %25 = arith.addf %23, %24 : vector<16x32xf32>
    %26 = arith.mulf %25, %21 : vector<16x32xf32>
    %cst_15 = arith.constant 1.42141378 : f32
    %27 = vector.broadcast %cst_15 : f32 to vector<16x32xf32>
    %28 = arith.addf %26, %27 : vector<16x32xf32>
    %29 = arith.mulf %28, %21 : vector<16x32xf32>
    %cst_16 = arith.constant -0.284496725 : f32
    %30 = vector.broadcast %cst_16 : f32 to vector<16x32xf32>
    %31 = arith.addf %29, %30 : vector<16x32xf32>
    %32 = arith.mulf %31, %21 : vector<16x32xf32>
    %cst_17 = arith.constant 0.254829586 : f32
    %33 = vector.broadcast %cst_17 : f32 to vector<16x32xf32>
    %34 = arith.addf %32, %33 : vector<16x32xf32>
    %35 = arith.mulf %34, %21 : vector<16x32xf32>
    %cst_18 = arith.constant 0.000000e+00 : f32
    %36 = vector.broadcast %cst_18 : f32 to vector<16x32xf32>
    %37 = arith.subf %36, %15 : vector<16x32xf32>
    %38 = arith.mulf %37, %15 : vector<16x32xf32>
    %39 = math.exp %38 : vector<16x32xf32>
    %40 = arith.mulf %35, %39 : vector<16x32xf32>
    %cst_19 = arith.constant 1.000000e+00 : f32
    %41 = vector.broadcast %cst_19 : f32 to vector<16x32xf32>
    %42 = arith.subf %41, %40 : vector<16x32xf32>
    %43 = arith.mulf %14, %42 : vector<16x32xf32>
    %cst_20 = arith.constant 1.000000e+00 : f32
    %44 = vector.broadcast %cst_20 : f32 to vector<16x32xf32>
    %45 = arith.addf %44, %43 : vector<16x32xf32>
    %46 = arith.mulf %7, %45 : vector<16x32xf32>
    %cst_21 = arith.constant dense<0.000000e+00> : vector<16xf32>
    %47 = vector.multi_reduction <add>, %46, %cst_21 [1] : vector<16x32xf32> to vector<16xf32>
    %48 = vector.shape_cast %47 : vector<16xf32> to vector<16x1xf32>
    %cst_22 = arith.constant 3.200000e+01 : f32
    %49 = vector.broadcast %cst_22 : f32 to vector<16x1xf32>
    %50 = arith.divf %48, %49 : vector<16x1xf32>
    %51 = vector.broadcast %50 : vector<16x1xf32> to vector<16x32xf32>
    %52 = arith.subf %46, %51 : vector<16x32xf32>
    %53 = arith.mulf %52, %52 : vector<16x32xf32>
    %cst_23 = arith.constant dense<0.000000e+00> : vector<16xf32>
    %54 = vector.multi_reduction <add>, %53, %cst_23 [1] : vector<16x32xf32> to vector<16xf32>
    %55 = vector.shape_cast %54 : vector<16xf32> to vector<16x1xf32>
    %cst_24 = arith.constant 3.200000e+01 : f32
    %56 = vector.broadcast %cst_24 : f32 to vector<16x1xf32>
    %57 = arith.divf %55, %56 : vector<16x1xf32>
    %cst_25 = arith.constant 9.99999996E-13 : f32
    %58 = vector.broadcast %cst_25 : f32 to vector<16x1xf32>
    %59 = arith.addf %57, %58 : vector<16x1xf32>
    %60 = math.rsqrt %59 : vector<16x1xf32>
    %61 = vector.broadcast %60 : vector<16x1xf32> to vector<16x32xf32>
    %62 = arith.mulf %52, %61 : vector<16x32xf32>
    %c0_26 = arith.constant 0 : index
    %c0_27 = arith.constant 0 : index
    %63 = vector.load %arg4[%c0_26, %c0_27] : memref<1x32xf32, #tpu.memory_space<vmem>>, vector<1x32xf32>
    %64 = vector.broadcast %63 : vector<1x32xf32> to vector<16x32xf32>
    %65 = arith.mulf %62, %64 : vector<16x32xf32>
    %c0_28 = arith.constant 0 : index
    %c0_29 = arith.constant 0 : index
    %66 = vector.load %arg5[%c0_28, %c0_29] : memref<1x32xf32, #tpu.memory_space<vmem>>, vector<1x32xf32>
    %67 = vector.broadcast %66 : vector<1x32xf32> to vector<16x32xf32>
    %68 = arith.addf %65, %67 : vector<16x32xf32>
    %c0_30 = arith.constant 0 : index
    %c0_31 = arith.constant 0 : index
    %69 = vector.load %arg6[%c0_30, %c0_31] : memref<16x32xf32, #tpu.memory_space<vmem>>, vector<16x32xf32>
    tpu.vector_store %arg6[%c0_30, %c0_31], %68 {strides = array<i32>} : memref<16x32xf32, #tpu.memory_space<vmem>>, vector<16x32xf32>,
    return
  }
  func.func @transform_0(%arg0: i32) -> (i32, i32) {
    %c0_i32 = arith.constant 0 : i32
    %c0_i32_0 = arith.constant 0 : i32
    return %arg0, %c0_i32 : i32, i32
  }
  func.func @transform_1(%arg0: i32) -> (i32, i32) {
    %c0_i32 = arith.constant 0 : i32
    %c0_i32_0 = arith.constant 0 : i32
    %c0_i32_1 = arith.constant 0 : i32
    return %c0_i32, %c0_i32_0 : i32, i32
  }
  func.func @transform_2(%arg0: i32) -> (i32, i32) {
    %c0_i32 = arith.constant 0 : i32
    %c0_i32_0 = arith.constant 0 : i32
    %c0_i32_1 = arith.constant 0 : i32
    return %c0_i32, %c0_i32_0 : i32, i32
  }
  func.func @transform_3(%arg0: i32) -> (i32, i32) {
    %c0_i32 = arith.constant 0 : i32
    %c0_i32_0 = arith.constant 0 : i32
    %c0_i32_1 = arith.constant 0 : i32
    return %c0_i32, %c0_i32_0 : i32, i32
  }
  func.func @transform_4(%arg0: i32) -> (i32, i32) {
    %c0_i32 = arith.constant 0 : i32
    %c0_i32_0 = arith.constant 0 : i32
    %c0_i32_1 = arith.constant 0 : i32
    return %c0_i32, %c0_i32_0 : i32, i32
  }
  func.func @transform_5(%arg0: i32) -> (i32, i32) {
    %c0_i32 = arith.constant 0 : i32
    %c0_i32_0 = arith.constant 0 : i32
    return %arg0, %c0_i32 : i32, i32
  }
}

</mosaic_0001>

<bundles_post_ra>
// kernel: bert2d_prediction_head_transform.1
= control target key start
LH: loop header
LB: loop body
LE: loop exit
PB: predicated region body
PF: predicated region fallthrough
CT: control target
= control target key end

     0   :  { %vm34_vm0 = vcmask 261120   ;;  %s384_s0 = inlined_call_operand.vmem [shape: f32[16,32], index: 0, kind: input, shape index: {}]   ;;  %s385_s1 = inlined_call_operand.vmem [shape: f32[32,32], index: 1, kind: input, shape index: {}]   ;;  %s386_s2 = inlined_call_operand.vmem [shape: f32[1,32], index: 2, kind: input, shape index: {}]   ;;  %s387_s3 = inlined_call_operand.vmem [shape: f32[1,32], index: 3, kind: input, shape index: {}]   ;;  %s388_s4 = inlined_call_operand.vmem [shape: f32[1,32], index: 4, kind: input, shape index: {}]   ;;  %s389_s5 = inlined_call_operand.hbm [shape: f32[16,32], index: 5, kind: output, shape index: {}]  }
   0x1   :  { %v23_v0 = vld [vmem:[%s385_s1] sm:$0xff]  ;;  %v24_v1 = vld [vmem:[%s385_s1 + $0x8] sm:$0xff]  ;;  %v25_v2 = vld [vmem:[%s385_s1 + $0x10] sm:$0xff] }
   0x2   :  { %v255_v3 = vpack.c.bf16 %v24_v1, %v23_v0  ;;  %v26_v4 = vld [vmem:[%s385_s1 + $0x18] sm:$0xff]  ;;  %v21_v5 = vld [vmem:[%s384_s0] sm:$0xff] }
   0x3   :  { %v259_v6 = vpack.c.bf16 %v26_v4, %v25_v2  ;;  %252 = vmatprep.mubr.msk.f32.mxu0 %vm34_vm0, %v21_v5 }
   0x4   :  { %10 = vsyncpa [#allocation3], 0  ;;  %256 = vmatprep.subr.bf16.mxu0 %v255_v3  ;;  %v22_v7 = vld [vmem:[%s384_s0 + $0x8] sm:$0xff]  ;;  %v233_v8 = vld [vmem:[%s386_s2] ss:$0 sm:$0xff]  ;;  %v303_v52 = vmov 1.0  }
   0x5   :  { %258 = vmatpush3.bf16.msra.mxu0 %v255_v3  ;;  %s304_s8 = smov [#allocation2]  }
   0x6   :  { %260 = vmatprep.subr.bf16.mxu0 %v259_v6  ;;  %s222_s9 = sshll.u32 %s304_s8, 4  ;;  %s223_s9 = int_to_ptr.vmem [resolvable:$true] %s222_s9 }
   0x7   :  { %s279_s10 = scalar_lea.vmem %s223_s9, 256  ;;  %p284_p1 = scmp.lt.s32.totalorder %s223_s9, %s223_s9 }
   0x8   :  { %p280_p0 = scmp.ne.s32.totalorder %s223_s9, %s279_s10  ;;  %p285_p2 = scmp.lt.s32.totalorder %s279_s10, %s279_s10 }
   0x9   :  { %262 = vmatpush3.bf16.msra.mxu0 %v259_v6 }
   0xa   :  { %p286_p3 = por %p285_p2, %p284_p1 }
   0xc   :  { %253 = vmatmul.mubr.msk.f32.vlgmr.msra.gmra.mrb[0].mxu0 %vm34_vm0, %v22_v7  ;;  %p287_p4 = pnand %p286_p3, %p280_p0 }
  0xdf   :  { %v254_v9 = vpop.f32.mrb[0].mxu0 }
  0xe0   :  { %v113_v10 = vadd.f32 %v254_v9, %v233_v8  ;;  %v107_v11 = vpop.f32.mrb[1].mxu0 }
  0xe1   :  { %v108_v12 = vadd.f32 %v233_v8, %v107_v11 }
  0xe2   :  { %v119_v13 = vmul.f32 0.70710677, %v113_v10  ;;  %v117_v61 = vmul.f32 0.5, %v113_v10 }
  0xe3   :  { %v118_v14 = vmul.f32 0.70710677, %v108_v12  ;;  %v116_v58 = vmul.f32 0.5, %v108_v12 }
  0xe4   :  { %v125_v15 = vand.u32 2147483647, %v119_v13  ;;  %vm121_vm1 = vcmp.lt.f32.partialorder %v119_v13, 0.0 }
  0xe5   :  { %v124_v16 = vand.u32 2147483647, %v118_v14  ;;  %vm120_vm2 = vcmp.lt.f32.partialorder %v118_v14, 0.0  ;;  %v123_v53 = vsel %vm121_vm1, -1.0, %v303_v52 }
  0xe6   :  { %v127_v17 = vmul.f32 0.3275911, %v125_v15  ;;  %v153_v21 = vsub.f32 0.0, %v125_v15  ;;  %v122_v55 = vsel %vm120_vm2, -1.0, %v303_v52 }
  0xe7   :  { %v126_v18 = vmul.f32 0.3275911, %v124_v16  ;;  %v152_v22 = vsub.f32 0.0, %v124_v16 }
  0xe8   :  { %v129_v19 = vadd.f32 1.0, %v127_v17  ;;  %v155_v24 = vmul.f32 %v153_v21, %v125_v15  ;;  %v237_v21 = vld [vmem:[%s388_s4] ss:$0 sm:$0xff] }
  0xe9   :  { %v128_v20 = vadd.f32 1.0, %v126_v18  ;;  %v154_v26 = vmul.f32 %v152_v22, %v124_v16 }
  0xea   :  { %267 = vrcp.f32 %v129_v19  ;;  %v158_v30 = vmul.f32 1.442695, %v155_v24  ;;  %v236_v19 = vld [vmem:[%s387_s3] ss:$0 sm:$0xff] }
  0xeb   :  { %269 = vrcp.f32 %v128_v20  ;;  %v156_v32 = vmul.f32 1.442695, %v154_v26 }
  0xec   :  { %271 = vpow2.f32 %v158_v30 }
  0xed   :  { %273 = vpow2.f32 %v156_v32 }
  0xf4   :  { %v268_v23 = vpop.eup %267 }
  0xf5   :  { %v270_v25 = vpop.eup %269  ;;  %v135_v27 = vmul.f32 1.0614054, %v268_v23 }
  0xf6   :  { %v134_v28 = vmul.f32 1.0614054, %v270_v25  ;;  %v272_v46 = vpop.eup %271 }
  0xf7   :  { %v137_v29 = vadd.f32 -1.4531521, %v135_v27  ;;  %v274_v48 = vpop.eup %273 }
  0xf8   :  { %v136_v31 = vadd.f32 -1.4531521, %v134_v28 }
  0xf9   :  { %v139_v33 = vmul.f32 %v268_v23, %v137_v29 }
  0xfa   :  { %v138_v34 = vmul.f32 %v270_v25, %v136_v31 }
  0xfb   :  { %v141_v35 = vadd.f32 1.4214138, %v139_v33 }
  0xfc   :  { %v140_v36 = vadd.f32 1.4214138, %v138_v34 }
  0xfd   :  { %v143_v37 = vmul.f32 %v268_v23, %v141_v35 }
  0xfe   :  { %v142_v38 = vmul.f32 %v270_v25, %v140_v36 }
  0xff   :  { %v145_v39 = vadd.f32 -0.28449672, %v143_v37 }
 0x100   :  { %v144_v40 = vadd.f32 -0.28449672, %v142_v38 }
 0x101   :  { %v147_v41 = vmul.f32 %v268_v23, %v145_v39 }
 0x102   :  { %v146_v42 = vmul.f32 %v270_v25, %v144_v40 }
 0x103   :  { %v149_v43 = vadd.f32 0.2548296, %v147_v41 }
 0x104   :  { %v148_v44 = vadd.f32 0.2548296, %v146_v42 }
 0x105   :  { %v151_v45 = vmul.f32 %v268_v23, %v149_v43 }
 0x106   :  { %v150_v47 = vmul.f32 %v270_v25, %v148_v44 }
 0x107   :  { %v161_v49 = vmul.f32 %v272_v46, %v151_v45 }
 0x108   :  { %v160_v50 = vmul.f32 %v274_v48, %v150_v47 }
 0x109   :  { %v163_v51 = vsub.f32 1.0, %v161_v49 }
 0x10a   :  { %v162_v54 = vsub.f32 1.0, %v160_v50 }
 0x10b   :  { %v165_v56 = vmul.f32 %v163_v51, %v123_v53 }
 0x10c   :  { %v164_v57 = vmul.f32 %v162_v54, %v122_v55 }
 0x10d   :  { %v167_v60 = vadd.f32 1.0, %v165_v56 }
 0x10e   :  { %v166_v59 = vadd.f32 1.0, %v164_v57 }
 0x10f   :  { %v169_v0 = vmul.f32 %v167_v60, %v117_v61 }
 0x110   :  { %v168_v62 = vmul.f32 %v166_v59, %v116_v58 }
 0x111   :  { %v173_v1 = vsel %vm34_vm0, %v169_v0, 0.0 }
 0x112   :  { %v170_v63 = vsel %vm34_vm0, %v168_v62, 0.0 }
 0x113   :  { %171 = vadd.xlane.f32.xlu0 %v170_v63 }
 0x117   :  { %174 = vadd.xlane.f32.xlu0 %v173_v1 }
 0x1a0   :  { %v172_v2 = vpop.xlane.xlu0 %171 }
 0x1a1   :  { %v177_v3 = vmul.f32 0.03125, %v172_v2 }
 0x1a3   :  { %v179_v4 = vsub.f32 %v168_v62, %v177_v3 }
 0x1a4   :  { %v175_v5 = vpop.xlane.xlu0 %174 }
 0x1a5   :  { %v178_v6 = vmul.f32 0.03125, %v175_v5  ;;  %v181_v7 = vmul.f32 %v179_v4, %v179_v4 }
 0x1a7   :  { %v180_v8 = vsub.f32 %v169_v0, %v178_v6  ;;  %v183_v9 = vsel %vm34_vm0, %v181_v7, 0.0 }
 0x1a8   :  { %184 = vadd.xlane.f32.xlu1 %v183_v9 }
 0x1a9   :  { %v182_v11 = vmul.f32 %v180_v8, %v180_v8 }
 0x1ab   :  { %v186_v10 = vsel %vm34_vm0, %v182_v11, 0.0 }
 0x1ac   :  { %187 = vadd.xlane.f32.xlu1 %v186_v10 }
 0x235   :  { %v185_v12 = vpop.xlane.xlu1 %184 }
 0x236   :  { %v189_v13 = vmul.f32 0.03125, %v185_v12 }
 0x238   :  { %v191_v14 = vadd.f32 1e-12, %v189_v13 }
 0x239   :  { %v188_v15 = vpop.xlane.xlu1 %187 }
 0x23a   :  { %275 = vrsqrt.f32 %v191_v14  ;;  %v190_v16 = vmul.f32 0.03125, %v188_v15 }
 0x23c   :  { %v192_v17 = vadd.f32 1e-12, %v190_v16 }
 0x23e   :  { %277 = vrsqrt.f32 %v192_v17 }
 0x244   :  { %v276_v18 = vpop.eup %275 }
 0x245   :  { %v195_v20 = vmul.f32 %v276_v18, %v179_v4 }
 0x247   :  { %v204_v22 = vmul.f32 %v236_v19, %v195_v20 }
 0x248   :  { %v278_v23 = vpop.eup %277 }
 0x249   :  { %v196_v24 = vmul.f32 %v278_v23, %v180_v8  ;;  %v213_v25 = vadd.f32 %v237_v21, %v204_v22 }
 0x24b   :  { %v205_v26 = vmul.f32 %v236_v19, %v196_v24  ;;  %215 = vst.msk [vmem:[#allocation2] sm:$0xff] %vm34_vm0, %v213_v25 }
 0x24d   :  { %v214_v27 = vadd.f32 %v237_v21, %v205_v26 }
 0x24f   :  { %216 = vst.msk [vmem:[#allocation2 + $0x8] sm:$0xff] %vm34_vm0, %v214_v27 }
 0x250   :  { %290 = shalt.err (!%p287_p4)
}
 0x251   :  { %s291_s11 = scalar_lea.hbm %s389_s5, 256 }
 0x252   :  { %p292_p5 = scmp.ne.s32.totalorder %s389_s5, %s291_s11  ;;  %p295_p6 = scmp.lt.u32.totalorder %s291_s11, %s389_s5 }
 0x254   :  { %p297_p7 = pnand %p295_p6, %p292_p5 }
 0x256   :  { %300 = shalt.err (!%p297_p7)
}
 0x257   :  { %s305_s16 = smov 128   ;;  %s306_s17 = smov 8  }
 0x258   :  { %228 = dma.vmem_to_hbm [thread:$0]  %s223_s9, 256, %s389_s5, [#allocation3], %s305_s16, %s305_s16, %s306_s17  }
 0x259   :  { %301 = dma.done.wait [#allocation3], 256  }
 0x25a   :  { %302 = vsyncadd [#allocation3], 4294967040 }
 0x25b   :  { %232 = vsyncpa [#allocation3], 1 }

</bundles_post_ra>
